<compile_context>
chip_gen: v7x
topology: tpu7x:2x2x1
jax: 0.10.0
libtpu: 0.0.40
codegen_flags: <defaults>
</compile_context>

<pallas_src>
import math

import jax
import jax.numpy as jnp
from jax.experimental import pallas as pl
from jax.experimental.pallas import tpu as pltpu

HIDDEN = 128


def _round_up(n, m):
    return ((n + m - 1) // m) * m


def dqn_kernel(x_ref, w1_ref, b1_ref, w2_ref, b2_ref, w3_ref, b3_ref, o_ref):
    # fc1 + ReLU (bf16 MXU operands, f32 accumulate / bias / ReLU)
    h1 = jnp.dot(x_ref[...], w1_ref[...], preferred_element_type=jnp.float32) + b1_ref[...]
    h1 = jnp.maximum(h1, 0.0).astype(jnp.bfloat16)
    # fc2 + ReLU
    h2 = jnp.dot(h1, w2_ref[...], preferred_element_type=jnp.float32) + b2_ref[...]
    h2 = jnp.maximum(h2, 0.0).astype(jnp.bfloat16)
    # fc3 (no activation)
    o_ref[...] = (
        jnp.dot(h2, w3_ref[...], preferred_element_type=jnp.float32) + b3_ref[...]
    ).astype(o_ref.dtype)


def init_dqn_params(key, input_dim, output_dim, hidden=HIDDEN):
    """torch.nn.Linear-style init (U[-1/sqrt(fan_in), 1/sqrt(fan_in)]).
    Weights stored as (in_features, out_features), f32."""
    keys = jax.random.split(key, 6)

    def linear(kw, kb, fan_in, fan_out):
        bound = 1.0 / math.sqrt(fan_in)
        W = jax.random.uniform(kw, (fan_in, fan_out), jnp.float32, -bound, bound)
        b = jax.random.uniform(kb, (1, fan_out), jnp.float32, -bound, bound)
        return W, b

    W1, b1 = linear(keys[0], keys[1], input_dim, hidden)
    W2, b2 = linear(keys[2], keys[3], hidden, hidden)
    W3, b3 = linear(keys[4], keys[5], hidden, output_dim)
    return {"W1": W1, "b1": b1, "W2": W2, "b2": b2, "W3": W3, "b3": b3}


def prepare_params(params):
    """Cast weights to bf16 (VMEM-resident MXU operands).  Only the tiny
    output dim is padded (to a multiple of 8 columns) so the result slab
    stays narrow; input dim stays unpadded.  Biases stay f32."""
    hidden, out_dim = params["W3"].shape
    out_pad = _round_up(out_dim, 8)
    W3 = jnp.zeros((hidden, out_pad), jnp.bfloat16).at[:, :out_dim].set(
        params["W3"].astype(jnp.bfloat16))
    b3 = jnp.zeros((1, out_pad), jnp.float32).at[:, :out_dim].set(params["b3"])
    return {
        "W1": params["W1"].astype(jnp.bfloat16),   # (in_dim, 128), unpadded
        "b1": params["b1"],
        "W2": params["W2"].astype(jnp.bfloat16),
        "b2": params["b2"],
        "W3": W3,                                  # (128, out_pad)
        "b3": b3,
    }


def dqn_forward(x, padded_params, output_dim, *, tb_max=2048):
    """x: (B, input_dim) f32; padded_params: output of prepare_params."""
    B, in_dim = x.shape
    hidden = padded_params["W1"].shape[1]
    out_pad = padded_params["W3"].shape[1]

    # Adaptive batch tiling: >= 2 grid steps (v7x megacore sharding), tile
    # rows a multiple of 16 (bf16 sublane packing), padding capped at 15 rows.
    n_steps = max(2, pl.cdiv(B, tb_max))
    TB = _round_up(pl.cdiv(B, n_steps), 16)
    Bp = n_steps * TB

    # Unpadded-feature, bf16 input slab (zero batch-pad rows are sliced away).
    x_pad = jnp.zeros((Bp, in_dim), jnp.bfloat16).at[:B, :].set(
        x.astype(jnp.bfloat16))

    flops = 2 * Bp * (in_dim * hidden + hidden * hidden + hidden * out_pad)
    bytes_accessed = (
        Bp * in_dim * 2                                                # bf16 x in
        + Bp * out_pad * 4                                             # f32 out
        + (in_dim * hidden + hidden * hidden + hidden * out_pad) * 2   # bf16 W
        + (2 * hidden + out_pad) * 4                                   # f32 biases
    )

    out = pl.pallas_call(
        dqn_kernel,
        out_shape=jax.ShapeDtypeStruct((Bp, out_pad), jnp.float32),
        grid=(n_steps,),
        in_specs=[
            pl.BlockSpec((TB, in_dim), lambda i: (i, 0)),       # x: batch-tiled
            pl.BlockSpec((in_dim, hidden), lambda i: (0, 0)),   # W1: resident
            pl.BlockSpec((1, hidden), lambda i: (0, 0)),        # b1
            pl.BlockSpec((hidden, hidden), lambda i: (0, 0)),   # W2
            pl.BlockSpec((1, hidden), lambda i: (0, 0)),        # b2
            pl.BlockSpec((hidden, out_pad), lambda i: (0, 0)),  # W3
            pl.BlockSpec((1, out_pad), lambda i: (0, 0)),       # b3
        ],
        out_specs=pl.BlockSpec((TB, out_pad), lambda i: (i, 0)),
        compiler_params=pltpu.CompilerParams(
            dimension_semantics=("parallel",),
            vmem_limit_bytes=32 * 1024 * 1024,
        ),
        cost_estimate=pl.CostEstimate(
            flops=flops, transcendentals=0, bytes_accessed=bytes_accessed),
    )(
        x_pad,
        padded_params["W1"], padded_params["b1"],
        padded_params["W2"], padded_params["b2"],
        padded_params["W3"], padded_params["b3"],
    )
    return out[:B, :output_dim]


if __name__ == "__main__":
    key = jax.random.PRNGKey(0)
    k_x, k_p = jax.random.split(key)

    input_dim = 16   # observation dim
    output_dim = 4   # number of actions
    batch = 2

    x = jax.random.normal(k_x, (batch, input_dim), jnp.float32)
    params = init_dqn_params(k_p, input_dim, output_dim)
    padded = prepare_params(params)

    out = dqn_forward(x, padded, output_dim)
    out = jax.block_until_ready(out)
    assert out.shape == (batch, output_dim)

    # Reference using the same bf16-operand / f32-accumulate math as the kernel.
    W1 = params["W1"].astype(jnp.bfloat16)
    W2 = params["W2"].astype(jnp.bfloat16)
    W3 = params["W3"].astype(jnp.bfloat16)
    h1 = jnp.maximum(
        jnp.dot(x.astype(jnp.bfloat16), W1, preferred_element_type=jnp.float32)
        + params["b1"], 0.0)
    h2 = jnp.maximum(
        jnp.dot(h1.astype(jnp.bfloat16), W2, preferred_element_type=jnp.float32)
        + params["b2"], 0.0)
    ref = (jnp.dot(h2.astype(jnp.bfloat16), W3, preferred_element_type=jnp.float32)
           + params["b3"])
    assert jnp.allclose(out, ref, atol=2e-3, rtol=2e-3)

    # Loose check against the full-f32 forward (bf16 operands ~1e-2 rel error).
    h1f = jnp.maximum(x @ params["W1"] + params["b1"], 0.0)
    h2f = jnp.maximum(h1f @ params["W2"] + params["b2"], 0.0)
    reff = h2f @ params["W3"] + params["b3"]
    assert jnp.allclose(out, reff, atol=5e-2, rtol=5e-2)

    print("KERNEL_OK")
</pallas_src>

<mosaic_0001>
module attributes {stable_mosaic.version = 11 : i64} {
  func.func @dqn_kernel(%arg0: i32, %arg1: memref<16x16xbf16, #tpu.memory_space<vmem>>, %arg2: memref<16x128xbf16, #tpu.memory_space<vmem>>, %arg3: memref<1x128xf32, #tpu.memory_space<vmem>>, %arg4: memref<128x128xbf16, #tpu.memory_space<vmem>>, %arg5: memref<1x128xf32, #tpu.memory_space<vmem>>, %arg6: memref<128x8xbf16, #tpu.memory_space<vmem>>, %arg7: memref<1x8xf32, #tpu.memory_space<vmem>>, %arg8: memref<16x8xf32, #tpu.memory_space<vmem>>) attributes {dimension_semantics = [#tpu.dimension_semantics<parallel>], iteration_bounds = array<i64: 2>, scalar_prefetch = 0 : i64, scratch_operands = 0 : i64, tpu.core_type = #tpu.core_type<tc>, window_params = [{transform_indices = @transform_0, window_bounds = array<i64: 16, 16>}, {pipeline_mode = #tpu.pipeline_mode<synchronous>, transform_indices = @transform_1, window_bounds = array<i64: 16, 128>}, {pipeline_mode = #tpu.pipeline_mode<synchronous>, transform_indices = @transform_2, window_bounds = array<i64: 1, 128>}, {pipeline_mode = #tpu.pipeline_mode<synchronous>, transform_indices = @transform_3, window_bounds = array<i64: 128, 128>}, {pipeline_mode = #tpu.pipeline_mode<synchronous>, transform_indices = @transform_4, window_bounds = array<i64: 1, 128>}, {pipeline_mode = #tpu.pipeline_mode<synchronous>, transform_indices = @transform_5, window_bounds = array<i64: 128, 8>}, {pipeline_mode = #tpu.pipeline_mode<synchronous>, transform_indices = @transform_6, window_bounds = array<i64: 1, 8>}, {transform_indices = @transform_7, window_bounds = array<i64: 16, 8>}]} {
    %c0 = arith.constant 0 : index
    %c0_0 = arith.constant 0 : index
    %0 = vector.load %arg1[%c0, %c0_0] : memref<16x16xbf16, #tpu.memory_space<vmem>>, vector<16x16xbf16>
    %c0_1 = arith.constant 0 : index
    %c0_2 = arith.constant 0 : index
    %1 = vector.load %arg2[%c0_1, %c0_2] : memref<16x128xbf16, #tpu.memory_space<vmem>>, vector<16x128xbf16>
    %cst = arith.constant dense<0.000000e+00> : vector<16x128xf32>
    %2 = tpu.matmul %0, %1, %cst {dimension_numbers = #tpu.dot_dimension_numbers<[1], [0], [0], [1], [0, 0, 1, 1], [], []>} : vector<16x16xbf16>, vector<16x128xbf16>, vector<16x128xf32> -> vector<16x128xf32>
    %c0_3 = arith.constant 0 : index
    %c0_4 = arith.constant 0 : index
    %3 = vector.load %arg3[%c0_3, %c0_4] : memref<1x128xf32, #tpu.memory_space<vmem>>, vector<1x128xf32>
    %4 = vector.broadcast %3 : vector<1x128xf32> to vector<16x128xf32>
    %5 = arith.addf %2, %4 : vector<16x128xf32>
    %cst_5 = arith.constant 0.000000e+00 : f32
    %6 = vector.broadcast %cst_5 : f32 to vector<16x128xf32>
    %7 = arith.maximumf %5, %6 : vector<16x128xf32>
    %8 = arith.truncf %7 : vector<16x128xf32> to vector<16x128xbf16>
    %c0_6 = arith.constant 0 : index
    %c0_7 = arith.constant 0 : index
    %9 = vector.load %arg4[%c0_6, %c0_7] : memref<128x128xbf16, #tpu.memory_space<vmem>>, vector<128x128xbf16>
    %cst_8 = arith.constant dense<0.000000e+00> : vector<16x128xf32>
    %10 = tpu.matmul %8, %9, %cst_8 {dimension_numbers = #tpu.dot_dimension_numbers<[1], [0], [0], [1], [0, 0, 1, 1], [], []>} : vector<16x128xbf16>, vector<128x128xbf16>, vector<16x128xf32> -> vector<16x128xf32>
    %c0_9 = arith.constant 0 : index
    %c0_10 = arith.constant 0 : index
    %11 = vector.load %arg5[%c0_9, %c0_10] : memref<1x128xf32, #tpu.memory_space<vmem>>, vector<1x128xf32>
    %12 = vector.broadcast %11 : vector<1x128xf32> to vector<16x128xf32>
    %13 = arith.addf %10, %12 : vector<16x128xf32>
    %cst_11 = arith.constant 0.000000e+00 : f32
    %14 = vector.broadcast %cst_11 : f32 to vector<16x128xf32>
    %15 = arith.maximumf %13, %14 : vector<16x128xf32>
    %16 = arith.truncf %15 : vector<16x128xf32> to vector<16x128xbf16>
    %c0_12 = arith.constant 0 : index
    %c0_13 = arith.constant 0 : index
    %17 = vector.load %arg6[%c0_12, %c0_13] : memref<128x8xbf16, #tpu.memory_space<vmem>>, vector<128x8xbf16>
    %cst_14 = arith.constant dense<0.000000e+00> : vector<16x8xf32>
    %18 = tpu.matmul %16, %17, %cst_14 {dimension_numbers = #tpu.dot_dimension_numbers<[1], [0], [0], [1], [0, 0, 1, 1], [], []>} : vector<16x128xbf16>, vector<128x8xbf16>, vector<16x8xf32> -> vector<16x8xf32>
    %c0_15 = arith.constant 0 : index
    %c0_16 = arith.constant 0 : index
    %19 = vector.load %arg7[%c0_15, %c0_16] : memref<1x8xf32, #tpu.memory_space<vmem>>, vector<1x8xf32>
    %20 = vector.broadcast %19 : vector<1x8xf32> to vector<16x8xf32>
    %21 = arith.addf %18, %20 : vector<16x8xf32>
    %c0_17 = arith.constant 0 : index
    %c0_18 = arith.constant 0 : index
    %22 = vector.load %arg8[%c0_17, %c0_18] : memref<16x8xf32, #tpu.memory_space<vmem>>, vector<16x8xf32>
    tpu.vector_store %arg8[%c0_17, %c0_18], %21 {strides = array<i32>} : memref<16x8xf32, #tpu.memory_space<vmem>>, vector<16x8xf32>,
    return
  }
  func.func @transform_0(%arg0: i32) -> (i32, i32) {
    %c0_i32 = arith.constant 0 : i32
    %c0_i32_0 = arith.constant 0 : i32
    return %arg0, %c0_i32 : i32, i32
  }
  func.func @transform_1(%arg0: i32) -> (i32, i32) {
    %c0_i32 = arith.constant 0 : i32
    %c0_i32_0 = arith.constant 0 : i32
    %c0_i32_1 = arith.constant 0 : i32
    return %c0_i32, %c0_i32_0 : i32, i32
  }
  func.func @transform_2(%arg0: i32) -> (i32, i32) {
    %c0_i32 = arith.constant 0 : i32
    %c0_i32_0 = arith.constant 0 : i32
    %c0_i32_1 = arith.constant 0 : i32
    return %c0_i32, %c0_i32_0 : i32, i32
  }
  func.func @transform_3(%arg0: i32) -> (i32, i32) {
    %c0_i32 = arith.constant 0 : i32
    %c0_i32_0 = arith.constant 0 : i32
    %c0_i32_1 = arith.constant 0 : i32
    return %c0_i32, %c0_i32_0 : i32, i32
  }
  func.func @transform_4(%arg0: i32) -> (i32, i32) {
    %c0_i32 = arith.constant 0 : i32
    %c0_i32_0 = arith.constant 0 : i32
    %c0_i32_1 = arith.constant 0 : i32
    return %c0_i32, %c0_i32_0 : i32, i32
  }
  func.func @transform_5(%arg0: i32) -> (i32, i32) {
    %c0_i32 = arith.constant 0 : i32
    %c0_i32_0 = arith.constant 0 : i32
    %c0_i32_1 = arith.constant 0 : i32
    return %c0_i32, %c0_i32_0 : i32, i32
  }
  func.func @transform_6(%arg0: i32) -> (i32, i32) {
    %c0_i32 = arith.constant 0 : i32
    %c0_i32_0 = arith.constant 0 : i32
    %c0_i32_1 = arith.constant 0 : i32
    return %c0_i32, %c0_i32_0 : i32, i32
  }
  func.func @transform_7(%arg0: i32) -> (i32, i32) {
    %c0_i32 = arith.constant 0 : i32
    %c0_i32_0 = arith.constant 0 : i32
    return %arg0, %c0_i32 : i32, i32
  }
}

</mosaic_0001>

<bundles_post_ra>
// kernel: tpu_custom_call.1
= control target key start
LH: loop header
LB: loop body
LE: loop exit
PB: predicated region body
PF: predicated region fallthrough
CT: control target
= control target key end

     0   :  { %s816_s24 = smov 0   ;;  %s920_s0 = inlined_call_operand.vmem [shape: bf16[32,16], index: 0, kind: input, shape index: {}]   ;;  %s921_s1 = inlined_call_operand.vmem [shape: bf16[16,128], index: 1, kind: input, shape index: {}]   ;;  %s922_s2 = inlined_call_operand.vmem [shape: f32[1,128], index: 2, kind: input, shape index: {}]   ;;  %s923_s3 = inlined_call_operand.vmem [shape: bf16[128,128], index: 3, kind: input, shape index: {}]   ;;  %s924_s4 = inlined_call_operand.vmem [shape: f32[1,128], index: 4, kind: input, shape index: {}]   ;;  %s925_s5 = inlined_call_operand.vmem [shape: bf16[128,8], index: 5, kind: input, shape index: {}]   ;;  %s926_s6 = inlined_call_operand.vmem [shape: f32[1,8], index: 6, kind: input, shape index: {}]   ;;  %s927_s7 = inlined_call_operand.vmem [shape: f32[32,8], index: 7, kind: output, shape index: {}]  }
   0x1 LB: > { %s639_s25 = sadd.s32 4294967295, %s772_s24   ;;  %p643_p0 = scmp.ge.s32.totalorder %s772_s24, 1  ;;  %s772_s24 = sphi %s816_s24, %s17_s24  }
   0x2   : > { %p238_p1 = scmp.lt.s32.totalorder %s772_s24, 3 }
   0x4   : > { %p239_p2 = pnand %p643_p0, %p238_p1 }
   0x5   : > { %v748_v0 = vld [vmem:[%s921_s1] sm:$0xff] (!%p239_p2)   ;;  %v774_v1 = vmov (!%p239_p2), 0.0   ;;  %s644_s28 = sshll.u32 (!%p239_p2), %s639_s25, 1  ;;  %vm775_vm0 = vmmov (!%p239_p2), 0   ;;  %v751_v3 = vld [vmem:[%s923_s3 + $0x8] sm:$0xff] (!%p239_p2)   ;;  %vm305_vm1 = vcmask (!%p239_p2), 130048  }
   0x6   : > { %242 = sbr.rel (%p239_p2) target bundleno = 674 (0x2a2), region = 48  ;;  %692 = vmatprep.subr.bf16.mxu0 (!%p239_p2), %v774_v1  ;;  %698 = vmatprep.subr.bf16.mxu1 (!%p239_p2), %v774_v1  ;;  %v750_v2 = vld [vmem:[%s923_s3] sm:$0xff] (!%p239_p2)   ;;  %p271_p3 = scmp.lt.s32.totalorder (!%p239_p2), %s644_s28, 3  ;;  %v752_v4 = vld [vmem:[%s923_s3 + $0x10] sm:$0xff] (!%p239_p2)   ;;  %v753_v6 = vld [vmem:[%s923_s3 + $0x18] sm:$0xff] (!%p239_p2)   ;;  %vm580_vm2 = vcmask (!%p239_p2), 64512  }
   0x7   : > { %693 = vmatpush3.bf16.msra.mxu0 (!%p239_p2), %v748_v0  ;;  %694 = vmatprep.mubr.msk.bf16.mxu0 (!%p239_p2), %vm775_vm0, %v774_v1  ;;  %v754_v7 = vld [vmem:[%s923_s3 + $0x20] sm:$0xff] (!%p239_p2)   ;;  %v755_v8 = vld [vmem:[%s923_s3 + $0x28] sm:$0xff] (!%p239_p2)   ;;  %v756_v9 = vld [vmem:[%s923_s3 + $0x30] sm:$0xff] (!%p239_p2)  }
   0x8   : > { %699 = vmatpush3.bf16.msra.mxu1 (!%p239_p2), %v750_v2  ;;  %714 = vmatprep.mubr.msk.bf16.mxu1 (!%p239_p2), %vm775_vm0, %v774_v1  ;;  %v757_v10 = vld [vmem:[%s923_s3 + $0x38] sm:$0xff] (!%p239_p2)   ;;  %v758_v11 = vld [vmem:[%s925_s5] sm:$0xff] (!%p239_p2)   ;;  %v759_v12 = vld [vmem:[%s925_s5 + $0x8] sm:$0xff] (!%p239_p2)  }
   0x9   : > { %700 = vmatprep.subr.bf16.mxu1 (!%p239_p2), %v774_v1  ;;  %718 = vmatprep.subr.bf16.mxu0 (!%p239_p2), %v774_v1  ;;  %v760_v13 = vld [vmem:[%s925_s5 + $0x10] sm:$0xff] (!%p239_p2)   ;;  %v761_v14 = vld [vmem:[%s925_s5 + $0x18] sm:$0xff] (!%p239_p2)   ;;  %v762_v15 = vld [vmem:[%s925_s5 + $0x20] sm:$0xff] (!%p239_p2)  }
   0xa   : > { %v763_v16 = vld [vmem:[%s925_s5 + $0x28] sm:$0xff] (!%p239_p2)   ;;  %v648_v17 = vld [vmem:[%s922_s2] ss:$0 sm:$0xff] (!%p239_p2)  ;;  %v764_v27 = vld [vmem:[%s925_s5 + $0x30] sm:$0xff] (!%p239_p2)  }
   0xb   : > { %v765_v28 = vld [vmem:[%s925_s5 + $0x38] sm:$0xff] (!%p239_p2)   ;;  %v652_v29 = vld [vmem:[%s924_s4] ss:$0 sm:$0xff] (!%p239_p2) }
   0xc   : > { %701 = vmatpush3.bf16.msra.mxu1 (!%p239_p2), %v751_v3  ;;  %v661_v39 = vld [vmem:[%s926_s6] ss:$0 sm:$0xff] (!%p239_p2) }
   0xd   : > { %s929_s28 = smov (!%p271_p3, %s644_s28), 3  ;;  %702 = vmatprep.subr.bf16.mxu1 %v774_v1 }
   0xe   : > { %s645_s10 = sshll.u32 %s929_s28, 2  ;;  %s647_s26 = sshll.u32 %s929_s28, 3 }
   0xf   : > { %s274_s13 = scalar_lea.vmem %s920_s0, %s645_s10  ;;  %s280_s9 = scalar_lea.vmem %s927_s7, %s647_s26 }
  0x10   : > { %v749_v5 = vld [vmem:[%s274_s13] sm:$0xff]   ;;  %703 = vmatpush3.bf16.msra.mxu1 %v752_v4 }
  0x11   : > { %695 = vmatmul.mubr.msk.bf16.vlgmr.msra.gmra.mrb[0].mxu0 %vm305_vm1, %v749_v5  ;;  %704 = vmatprep.subr.bf16.mxu1 %v774_v1 }
  0x12   : > { %734 = vmatprep.mubr.msk.bf16.mxu0 %vm775_vm0, %v774_v1  ;;  %719 = vmatpush3.bf16.msra.mxu0 %v758_v11 }
  0x13   : > { %720 = vmatprep.subr.bf16.mxu0 %v774_v1 }
  0x14   : > { %705 = vmatpush3.bf16.msra.mxu1 %v753_v6 }
  0x15   : > { %706 = vmatprep.subr.bf16.mxu1 %v774_v1 }
  0x16   : > { %721 = vmatpush3.bf16.msra.mxu0 %v759_v12 }
  0x17   : > { %722 = vmatprep.subr.bf16.mxu0 %v774_v1 }
  0x18   : > { %707 = vmatpush3.bf16.msra.mxu1 %v754_v7 }
  0x19   : > { %708 = vmatprep.subr.bf16.mxu1 %v774_v1 }
  0x1a   : > { %723 = vmatpush3.bf16.msra.mxu0 %v760_v13 }
  0x1b   : > { %724 = vmatprep.subr.bf16.mxu0 %v774_v1 }
  0x1c   : > { %709 = vmatpush3.bf16.msra.mxu1 %v755_v8 }
  0x1d   : > { %710 = vmatprep.subr.bf16.mxu1 %v774_v1 }
  0x1e   : > { %725 = vmatpush3.bf16.msra.mxu0 %v761_v14 }
  0x1f   : > { %726 = vmatprep.subr.bf16.mxu0 %v774_v1 }
  0x20   : > { %711 = vmatpush3.bf16.msra.mxu1 %v756_v9 }
  0x21   : > { %712 = vmatprep.subr.bf16.mxu1 %v774_v1 }
  0x22   : > { %727 = vmatpush3.bf16.msra.mxu0 %v762_v15 }
  0x23   : > { %728 = vmatprep.subr.bf16.mxu0 %v774_v1 }
  0x24   : > { %713 = vmatpush3.bf16.msra.mxu1 %v757_v10 }
  0x26   : > { %729 = vmatpush3.bf16.msra.mxu0 %v763_v16 }
  0x27   : > { %730 = vmatprep.subr.bf16.mxu0 %v774_v1 }
  0x2a   : > { %731 = vmatpush3.bf16.msra.mxu0 %v764_v27 }
  0x2b   : > { %732 = vmatprep.subr.bf16.mxu0 %v774_v1 }
  0x2e   : > { %733 = vmatpush3.bf16.msra.mxu0 %v765_v28 }
  0xe4   : > { %v343_v18 = vpop.f32.mrb[0].mxu0 }
  0xe5   : > { %v344_v19 = vadd.f32 %v648_v17, %v343_v18  ;;  %v696_v20 = vpop.f32.mrb[1].mxu0 }
  0xe6   : > { %v346_v21 = vpop.f32.mrb[2].mxu0 }
  0xe7   : > { %v347_v22 = vadd.f32 %v648_v17, %v346_v21  ;;  %v697_v23 = vpop.f32.mrb[3].mxu0  ;;  %v350_v24 = vmax.f32 %v344_v19, 0.0 }
  0xe9   : > { %v351_v25 = vmax.f32 %v347_v22, 0.0 }
  0xeb   : > { %v352_v26 = vpack.c.bf16 %v351_v25, %v350_v24 }
  0xed   : > { %715 = vmatmul.mubr.bf16.vlgmr.msra.gmra.mrb[0].mxu1 %v352_v26 }
 0x1c0   : > { %v458_v30 = vpop.f32.mrb[0].mxu1 }
 0x1c1   : > { %v459_v31 = vadd.f32 %v652_v29, %v458_v30  ;;  %v716_v32 = vpop.f32.mrb[1].mxu1 }
 0x1c2   : > { %v461_v33 = vpop.f32.mrb[2].mxu1 }
 0x1c3   : > { %v462_v34 = vadd.f32 %v652_v29, %v461_v33  ;;  %v717_v35 = vpop.f32.mrb[3].mxu1  ;;  %v465_v36 = vmax.f32 %v459_v31, 0.0 }
 0x1c5   : > { %v466_v37 = vmax.f32 %v462_v34, 0.0 }
 0x1c7   : > { %v467_v38 = vpack.c.bf16 %v466_v37, %v465_v36 }
 0x1c9   : > { %735 = vmatmul.mubr.bf16.vlgmr.msra.gmra.mrb[4].mxu0 %v467_v38 }
 0x29c   : > { %v573_v40 = vpop.f32.mrb[4].mxu0 }
 0x29d   : > { %v574_v41 = vadd.f32 %v661_v39, %v573_v40  ;;  %v736_v42 = vpop.f32.mrb[5].mxu0 }
 0x29e   : > { %v576_v43 = vpop.f32.mrb[6].mxu0 }
 0x29f   : > { %581 = vst.msk [vmem:[%s280_s9] sm:$0xff] %vm580_vm2, %v574_v41  ;;  %v577_v44 = vadd.f32 %v661_v39, %v576_v43  ;;  %v737_v45 = vpop.f32.mrb[7].mxu0 }
 0x2a1   : > { %582 = vst.msk [vmem:[%s280_s9 + $0x8] sm:$0xff] %vm580_vm2, %v577_v44 }
 0x2a2 PF: > { %s17_s24 = sadd.s32 1, %s772_s24  }
 0x2a3   : > { %p14_p4 = scmp.ge.s32.totalorder %s17_s24, 4  }
 0x2a5   :  { %16 = sbr.rel (!%p14_p4) target bundleno = 1 (0x1), region = 78 }

</bundles_post_ra>
